<compile_context>
chip_gen: v6e
topology: v6e:2x2x1
jax: 0.10.0
libtpu: 0.0.40
codegen_flags: <defaults>
</compile_context>

<pallas_src>
import math
import functools

import jax
import jax.numpy as jnp
from jax.experimental import pallas as pl
from jax.experimental.pallas import tpu as pltpu


# ---------------------------------------------------------------------------
# Kernel 1: linear projection + head split  (x @ W_t + b) -> (H, ts, d_k)
# ---------------------------------------------------------------------------
def _proj_heads_kernel(x_ref, w_ref, b_ref, out_ref, *, n_heads, d_k,
                       compute_dtype):
    x = x_ref[0]                                              # (ts, D)
    p = jnp.dot(x.astype(compute_dtype), w_ref[...],
                preferred_element_type=jnp.float32) + b_ref[...]
    ts = p.shape[0]
    ph = jnp.transpose(p.reshape(ts, n_heads, d_k), (1, 0, 2))  # (H, ts, d_k)
    out_ref[0] = ph.astype(out_ref.dtype)


# ---------------------------------------------------------------------------
# Kernel 2: flash-attention core on pre-projected, head-major Q/K/V
# ---------------------------------------------------------------------------
def _flash_attn_kernel(q_ref, k_ref, v_ref, out_ref,
                       m_scr, l_scr, acc_scr, *, compute_dtype):
    ki = pl.program_id(3)
    last_ki = pl.num_programs(3) - 1

    @pl.when(ki == 0)
    def _init():
        m_scr[...] = jnp.full(m_scr.shape, -jnp.inf, m_scr.dtype)
        l_scr[...] = jnp.zeros_like(l_scr)
        acc_scr[...] = jnp.zeros_like(acc_scr)

    q = q_ref[0]                                              # (hb, tq, d_k), pre-scaled
    k = k_ref[0]                                              # (hb, tk, d_k)
    v = v_ref[0]                                              # (hb, tk, d_k)

    # TODO(synk): optional `mask` argument of the PyTorch module is not wired
    # through (forward is exercised with mask=None).  If added later, guard
    # the finalize against fully-masked rows (l == 0).
    s = jnp.einsum("hqd,hkd->hqk", q, k,
                   preferred_element_type=jnp.float32)        # (hb, tq, tk) f32

    # ---- online softmax (f32, lane-dense (hb, tq) running stats) ----
    m_prev = m_scr[...]                                       # (hb, tq)
    m_new = jnp.maximum(m_prev, jnp.max(s, axis=-1))          # (hb, tq)
    alpha = jnp.exp(m_prev - m_new)                           # (hb, tq)
    p = jnp.exp(s - m_new[..., None])                         # (hb, tq, tk)
    l_scr[...] = alpha * l_scr[...] + jnp.sum(p, axis=-1)
    acc_scr[...] = alpha[..., None] * acc_scr[...] + jnp.einsum(
        "hqk,hkd->hqd", p.astype(compute_dtype), v,
        preferred_element_type=jnp.float32)
    m_scr[...] = m_new

    @pl.when(ki == last_ki)
    def _finalize():
        approx = compute_dtype != jnp.float32                 # EUP recip only in bf16 path
        inv_l = pl.reciprocal(l_scr[...], approx=approx)      # (hb, tq)
        ctx = acc_scr[...] * inv_l[..., None]                 # (hb, tq, d_k) f32
        hb, tq, dk = ctx.shape
        out_ref[0] = jnp.transpose(ctx, (1, 0, 2)).reshape(
            tq, hb * dk).astype(out_ref.dtype)


# ---------------------------------------------------------------------------
# Kernel 3: output projection  (ctx @ Wo_t + bo)
# ---------------------------------------------------------------------------
def _linear_kernel(x_ref, w_ref, b_ref, out_ref, *, compute_dtype):
    x = x_ref[0]                                              # (ts, D)
    out = jnp.dot(x.astype(compute_dtype), w_ref[...],
                  preferred_element_type=jnp.float32) + b_ref[...]
    out_ref[0] = out.astype(out_ref.dtype)


# ---------------------------------------------------------------------------
# Tiling helpers
# ---------------------------------------------------------------------------
def _pick_tile(s, target):
    """Largest divisor of s that is <= target, preferring MXU/sublane-friendly
    alignments (256 / 128 / 16 / 8).  Falls back to the full length only for
    pathological (e.g. prime) lengths -- correct, but VMEM-heavy for long S."""
    if s <= target:
        return s
    for align in (256, 128, 16, 8):
        for t in range(min(target, s), align - 1, -1):
            if s % t == 0 and t % align == 0:
                return t
    # TODO(synk): pad odd sequence lengths instead of falling back to un-tiled.
    return s


def _pick_head_block(n_heads, d_k):
    """Smallest divisor hb of n_heads with hb*d_k a multiple of 128:
    lane-dense context output blocks + maximal head-group parallelism
    (keeps both v7x TensorCores fed even for B=1).  Falls back to all heads."""
    for hb in range(1, n_heads + 1):
        if n_heads % hb == 0 and (hb * d_k) % 128 == 0:
            return hb
    return n_heads


def _project_to_heads(x, w_t, b, *, n_heads, d_k, tile, compute_dtype,
                      vmem_limit_bytes):
    """x: (B, S, D) -> head-major (B, H, S, d_k) in compute_dtype."""
    B, S, D = x.shape
    ts = _pick_tile(S, tile)
    n_s = S // ts
    kernel = functools.partial(_proj_heads_kernel, n_heads=n_heads, d_k=d_k,
                               compute_dtype=compute_dtype)
    # TODO(synk): weight/bias index maps are constant; pipeline_mode=pl.Buffered(1)
    # (or memory_space=pl.ANY + one manual copy) would drop the second buffer.
    return pl.pallas_call(
        kernel,
        out_shape=jax.ShapeDtypeStruct((B, n_heads, S, d_k), compute_dtype),
        grid_spec=pltpu.PrefetchScalarGridSpec(
            num_scalar_prefetch=0,
            grid=(B, n_s),
            in_specs=[pl.BlockSpec((1, ts, D), lambda b, si: (b, si, 0)),
                      pl.BlockSpec((D, D), lambda b, si: (0, 0)),
                      pl.BlockSpec((1, D), lambda b, si: (0, 0))],
            out_specs=pl.BlockSpec((1, n_heads, ts, d_k),
                                   lambda b, si: (b, 0, si, 0)),
        ),
        compiler_params=pltpu.CompilerParams(
            dimension_semantics=("parallel", "parallel"),
            vmem_limit_bytes=vmem_limit_bytes),
    )(x, w_t, b)


# ---------------------------------------------------------------------------
# Public wrapper
# ---------------------------------------------------------------------------
def multi_head_attention(query, key, value, params, *, n_heads,
                         q_tile=256, kv_tile=256, proj_tile=256,
                         compute_dtype=jnp.bfloat16,
                         vmem_limit_bytes=64 * 1024 * 1024):
    """query/key/value: (B, S, D).  Returns (B, Sq, D) in query.dtype."""
    B, Sq, D = query.shape
    Skv = key.shape[1]
    assert value.shape[1] == Skv
    assert D % n_heads == 0
    d_k = D // n_heads

    wq, bq, wk, bk, wv, bv, wo, bo = params
    scale = 1.0 / math.sqrt(d_k)

    # Host-side, one-time prep: pre-transpose (kernel computes x @ W), fold the
    # 1/sqrt(d_k) scale into the Q projection, cast weights to compute_dtype.
    wq_t = (wq.T * scale).astype(compute_dtype)
    wk_t = wk.T.astype(compute_dtype)
    wv_t = wv.T.astype(compute_dtype)
    wo_t = wo.T.astype(compute_dtype)
    bq_s = (bq * scale).reshape(1, D).astype(jnp.float32)
    bk_r = bk.reshape(1, D).astype(jnp.float32)
    bv_r = bv.reshape(1, D).astype(jnp.float32)
    bo_r = bo.reshape(1, D).astype(jnp.float32)

    # ---- 1) project Q/K/V once, head-major, in compute_dtype --------------
    qh = _project_to_heads(query, wq_t, bq_s, n_heads=n_heads, d_k=d_k,
                           tile=proj_tile, compute_dtype=compute_dtype,
                           vmem_limit_bytes=vmem_limit_bytes)
    kh = _project_to_heads(key, wk_t, bk_r, n_heads=n_heads, d_k=d_k,
                           tile=proj_tile, compute_dtype=compute_dtype,
                           vmem_limit_bytes=vmem_limit_bytes)
    vh = _project_to_heads(value, wv_t, bv_r, n_heads=n_heads, d_k=d_k,
                           tile=proj_tile, compute_dtype=compute_dtype,
                           vmem_limit_bytes=vmem_limit_bytes)

    # ---- 2) flash-attention core ------------------------------------------
    tq = _pick_tile(Sq, q_tile)
    tk = _pick_tile(Skv, kv_tile)
    n_q, n_kv = Sq // tq, Skv // tk
    hb = _pick_head_block(n_heads, d_k)
    n_hg = n_heads // hb

    qh_spec = pl.BlockSpec((1, hb, tq, d_k), lambda b, hg, qi, ki: (b, hg, qi, 0))
    kv_spec = pl.BlockSpec((1, hb, tk, d_k), lambda b, hg, qi, ki: (b, hg, ki, 0))
    ctx_spec = pl.BlockSpec((1, tq, hb * d_k), lambda b, hg, qi, ki: (b, qi, hg))

    ctx = pl.pallas_call(
        functools.partial(_flash_attn_kernel, compute_dtype=compute_dtype),
        out_shape=jax.ShapeDtypeStruct((B, Sq, D), compute_dtype),
        grid_spec=pltpu.PrefetchScalarGridSpec(
            num_scalar_prefetch=0,
            grid=(B, n_hg, n_q, n_kv),          # kv (reduction) axis last
            in_specs=[qh_spec, kv_spec, kv_spec],
            out_specs=ctx_spec,
            scratch_shapes=[
                pltpu.VMEM((hb, tq), jnp.float32),        # running max (lane-dense)
                pltpu.VMEM((hb, tq), jnp.float32),        # running sum (lane-dense)
                pltpu.VMEM((hb, tq, d_k), jnp.float32),   # output accumulator
            ],
        ),
        compiler_params=pltpu.CompilerParams(
            dimension_semantics=("parallel", "parallel", "parallel", "arbitrary"),
            vmem_limit_bytes=vmem_limit_bytes),
    )(qh, kh, vh)

    # ---- 3) output projection ----------------------------------------------
    ts = _pick_tile(Sq, proj_tile)
    n_s = Sq // ts
    out = pl.pallas_call(
        functools.partial(_linear_kernel, compute_dtype=compute_dtype),
        out_shape=jax.ShapeDtypeStruct((B, Sq, D), query.dtype),
        grid_spec=pltpu.PrefetchScalarGridSpec(
            num_scalar_prefetch=0,
            grid=(B, n_s),
            in_specs=[pl.BlockSpec((1, ts, D), lambda b, si: (b, si, 0)),
                      pl.BlockSpec((D, D), lambda b, si: (0, 0)),
                      pl.BlockSpec((1, D), lambda b, si: (0, 0))],
            out_specs=pl.BlockSpec((1, ts, D), lambda b, si: (b, si, 0)),
        ),
        compiler_params=pltpu.CompilerParams(
            dimension_semantics=("parallel", "parallel"),
            vmem_limit_bytes=vmem_limit_bytes),
    )(ctx, wo_t, bo_r)
    return out


# ---------------------------------------------------------------------------
# Pure-JAX reference mirroring the PyTorch forward
# ---------------------------------------------------------------------------
def _reference(query, key, value, params, *, n_heads):
    B, S, D = query.shape
    d_k = D // n_heads
    wq, bq, wk, bk, wv, bv, wo, bo = params

    def lin(x, w, b):
        return x @ w.T + b

    Q = lin(query, wq, bq).reshape(B, S, n_heads, d_k).transpose(0, 2, 1, 3)
    K = lin(key, wk, bk).reshape(B, S, n_heads, d_k).transpose(0, 2, 1, 3)
    V = lin(value, wv, bv).reshape(B, S, n_heads, d_k).transpose(0, 2, 1, 3)

    scores = jnp.einsum("bhqd,bhkd->bhqk", Q, K) / math.sqrt(d_k)
    attn = jax.nn.softmax(scores, axis=-1)
    ctx = jnp.einsum("bhqk,bhkd->bhqd", attn, V)
    ctx = ctx.transpose(0, 2, 1, 3).reshape(B, S, D)
    return lin(ctx, wo, bo)


if __name__ == "__main__":
    B, S, D, H = 2, 8, 32, 4  # batch, seq, d_model, n_heads

    key0 = jax.random.PRNGKey(0)
    keys = jax.random.split(key0, 12)

    # Deterministic parameter init (nn.Linear shapes: W (D, D), b (D,))
    scale = 1.0 / math.sqrt(D)
    wq = jax.random.uniform(keys[0], (D, D), jnp.float32, -scale, scale)
    bq = jax.random.uniform(keys[1], (D,), jnp.float32, -scale, scale)
    wk = jax.random.uniform(keys[2], (D, D), jnp.float32, -scale, scale)
    bk = jax.random.uniform(keys[3], (D,), jnp.float32, -scale, scale)
    wv = jax.random.uniform(keys[4], (D, D), jnp.float32, -scale, scale)
    bv = jax.random.uniform(keys[5], (D,), jnp.float32, -scale, scale)
    wo = jax.random.uniform(keys[6], (D, D), jnp.float32, -scale, scale)
    bo = jax.random.uniform(keys[7], (D,), jnp.float32, -scale, scale)
    params = (wq, bq, wk, bk, wv, bv, wo, bo)

    query = jax.random.normal(keys[8], (B, S, D), jnp.float32)
    key_ = jax.random.normal(keys[9], (B, S, D), jnp.float32)
    value = jax.random.normal(keys[10], (B, S, D), jnp.float32)

    ref = _reference(query, key_, value, params, n_heads=H)

    # f32 path: strict check against the reference.
    out_f32 = multi_head_attention(query, key_, value, params, n_heads=H,
                                   compute_dtype=jnp.float32)
    out_f32 = jax.block_until_ready(out_f32)
    assert out_f32.shape == (B, S, D)
    assert jnp.allclose(out_f32, ref, atol=1e-4, rtol=1e-4), \
        "f32 mismatch vs JAX reference"

    # Default path (bf16 MXU operands, f32 accumulation + f32 softmax): loose tol.
    out_bf16 = multi_head_attention(query, key_, value, params, n_heads=H)
    out_bf16 = jax.block_until_ready(out_bf16)
    assert out_bf16.shape == (B, S, D)
    assert jnp.allclose(out_bf16, ref, atol=5e-2, rtol=5e-2), \
        "bf16 mismatch vs JAX reference"

    print("KERNEL_OK")
</pallas_src>

<mosaic_0001>
module attributes {stable_mosaic.version = 11 : i64} {
  func.func @_proj_heads_kernel(%arg0: i32, %arg1: i32, %arg2: memref<1x8x32xf32, #tpu.memory_space<vmem>>, %arg3: memref<32x32xf32, #tpu.memory_space<vmem>>, %arg4: memref<1x32xf32, #tpu.memory_space<vmem>>, %arg5: memref<1x4x8x8xf32, #tpu.memory_space<vmem>>) attributes {dimension_semantics = [#tpu.dimension_semantics<parallel>, #tpu.dimension_semantics<parallel>], iteration_bounds = array<i64: 2, 1>, scalar_prefetch = 0 : i64, scratch_operands = 0 : i64, tpu.core_type = #tpu.core_type<tc>, window_params = [{transform_indices = @transform_0, window_bounds = array<i64: 1, 8, 32>}, {pipeline_mode = #tpu.pipeline_mode<synchronous>, transform_indices = @transform_1, window_bounds = array<i64: 32, 32>}, {pipeline_mode = #tpu.pipeline_mode<synchronous>, transform_indices = @transform_2, window_bounds = array<i64: 1, 32>}, {transform_indices = @transform_3, window_bounds = array<i64: 1, 4, 8, 8>}]} {
    %c0 = arith.constant 0 : index
    %c0_0 = arith.constant 0 : index
    %c0_1 = arith.constant 0 : index
    %0 = vector.load %arg2[%c0, %c0_0, %c0_1] : memref<1x8x32xf32, #tpu.memory_space<vmem>>, vector<1x8x32xf32>
    %1 = vector.shape_cast %0 : vector<1x8x32xf32> to vector<8x32xf32>
    %c0_2 = arith.constant 0 : index
    %c0_3 = arith.constant 0 : index
    %2 = vector.load %arg3[%c0_2, %c0_3] : memref<32x32xf32, #tpu.memory_space<vmem>>, vector<32x32xf32>
    %cst = arith.constant dense<0.000000e+00> : vector<8x32xf32>
    %3 = tpu.matmul %1, %2, %cst {dimension_numbers = #tpu.dot_dimension_numbers<[1], [0], [0], [1], [0, 0, 1, 1], [], []>} : vector<8x32xf32>, vector<32x32xf32>, vector<8x32xf32> -> vector<8x32xf32>
    %c0_4 = arith.constant 0 : index
    %c0_5 = arith.constant 0 : index
    %4 = vector.load %arg4[%c0_4, %c0_5] : memref<1x32xf32, #tpu.memory_space<vmem>>, vector<1x32xf32>
    %5 = vector.broadcast %4 : vector<1x32xf32> to vector<8x32xf32>
    %6 = arith.addf %3, %5 : vector<8x32xf32>
    %7 = vector.shape_cast %6 : vector<8x32xf32> to vector<8x4x8xf32>
    %8 = tpu.transpose %7, [1, 0, 2] : vector<8x4x8xf32> -> vector<4x8x8xf32>
    %c0_6 = arith.constant 0 : index
    %c0_7 = arith.constant 0 : index
    %c0_8 = arith.constant 0 : index
    %c0_9 = arith.constant 0 : index
    %9 = vector.load %arg5[%c0_6, %c0_7, %c0_8, %c0_9] : memref<1x4x8x8xf32, #tpu.memory_space<vmem>>, vector<1x4x8x8xf32>
    %10 = vector.shape_cast %9 : vector<1x4x8x8xf32> to vector<4x8x8xf32>
    %11 = vector.shape_cast %8 : vector<4x8x8xf32> to vector<1x4x8x8xf32>
    tpu.vector_store %arg5[%c0_6, %c0_7, %c0_8, %c0_9], %11 {strides = array<i32>} : memref<1x4x8x8xf32, #tpu.memory_space<vmem>>, vector<1x4x8x8xf32>,
    return
  }
  func.func @transform_0(%arg0: i32, %arg1: i32) -> (i32, i32, i32) {
    %c0_i32 = arith.constant 0 : i32
    %c0_i32_0 = arith.constant 0 : i32
    return %arg0, %arg1, %c0_i32 : i32, i32, i32
  }
  func.func @transform_1(%arg0: i32, %arg1: i32) -> (i32, i32) {
    %c0_i32 = arith.constant 0 : i32
    %c0_i32_0 = arith.constant 0 : i32
    %c0_i32_1 = arith.constant 0 : i32
    return %c0_i32, %c0_i32_0 : i32, i32
  }
  func.func @transform_2(%arg0: i32, %arg1: i32) -> (i32, i32) {
    %c0_i32 = arith.constant 0 : i32
    %c0_i32_0 = arith.constant 0 : i32
    %c0_i32_1 = arith.constant 0 : i32
    return %c0_i32, %c0_i32_0 : i32, i32
  }
  func.func @transform_3(%arg0: i32, %arg1: i32) -> (i32, i32, i32, i32) {
    %c0_i32 = arith.constant 0 : i32
    %c0_i32_0 = arith.constant 0 : i32
    %c0_i32_1 = arith.constant 0 : i32
    return %arg0, %c0_i32, %arg1, %c0_i32_0 : i32, i32, i32, i32
  }
}

</mosaic_0001>

<bundles_post_ra>
// kernel: tpu_custom_call.1
= control target key start
LH: loop header
LB: loop body
LE: loop exit
PB: predicated region body
PF: predicated region fallthrough
CT: control target
= control target key end

     0   :  { %8 = vsyncpa [#allocation3], 0  ;;  %s1044_s0 = inlined_call_operand.hbm [shape: f32[2,8,32], index: 0, kind: input, shape index: {}]   ;;  %s1045_s1 = inlined_call_operand.hbm [shape: f32[32,32], index: 1, kind: input, shape index: {}]   ;;  %s1046_s2 = inlined_call_operand.vmem [shape: f32[1,32], index: 2, kind: input, shape index: {}]   ;;  %s1047_s3 = inlined_call_operand.hbm [shape: f32[2,4,8,8], index: 3, kind: output, shape index: {}]  }
   0x1   :  { %10 = vsyncpa [#allocation3 + $0x1], 0 }
   0x2   :  { %11 = vsyncpa [#allocation6], 0 }
   0x3   :  { %12 = vsyncpa [#allocation4], 0 }
   0x4   :  { %14 = vsyncpa [#allocation4 + $0x1], 0  ;;  %s859_s12 = smov 0   ;;  %s861_s13 = smov 0  }
   0x5   :  { %s863_s14 = smov 0   ;;  %s865_s15 = smov 0  }
   0x6   :  { %s867_s16 = smov 0   ;;  %s869_s17 = smov 0  }
   0x7 LB: > { %s564_s18 = sadd.s32 4294967295, %s823_s17   ;;  %s565_s19 = sadd.s32 4294967294, %s823_s17   ;;  %s823_s17 = sphi %s869_s17, %s20_s17   ;;  %s819_s16 = sphi %s867_s16, %s1065_s16   ;;  %s815_s15 = sphi %s865_s15, %s1064_s15   ;;  %s811_s14 = sphi %s863_s14, %s1063_s14   ;;  %s807_s13 = sphi %s861_s13, %s1062_s13   ;;  %s803_s12 = sphi %s859_s12, %s1061_s12  }
   0x8   : > { %p54_p0 = scmp.ne.s32.totalorder %s807_s13, %s803_s12  ;;  %p893_p1 = scmp.eq.s32.totalorder %s564_s18, 0 }
   0x9   : > { %p897_p2 = scmp.eq.s32.totalorder %s564_s18, 1  ;;  %p128_p3 = scmp.eq.s32.totalorder %s565_s19, 1 }
   0xa   : > { %p903_p4 = por %p893_p1, %p54_p0  ;;  %p566_p5 = scmp.ge.s32.totalorder %s823_s17, 1 }
   0xb   : > { %p908_p6 = por %p128_p3, %p54_p0  ;;  %p135_p7 = scmp.lt.s32.totalorder %s823_s17, 3 }
   0xc   : > { %s1051_s22 = scalar_select %p903_p4, 1, 0 }
   0xd   : > { %s1052_s23 = scalar_select %p908_p6, 1, 0 }
   0xe   : > { %p913_p8 = pnand %p566_p5, %p135_p7  ;;  %s825_s25 = smov [#allocation5]  }
   0xf   : > { %s147_s26 = sshll.u32 %s825_s25, 4  ;;  %s32_s28 = sadd.s32 1, %s819_s16  ;;  %s148_s26 = int_to_ptr.vmem [resolvable:$true] %s147_s26 }
  0x10   : > { %p609_p9 = pneg %p913_p8  ;;  %s696_s29 = scalar_lea.vmem %s148_s26, 512 }
  0x11   : > { %p697_p13 = scmp.ne.s32.totalorder %s148_s26, %s696_s29  ;;  %p704_p5 = scmp.lt.s32.totalorder %s148_s26, %s148_s26 }
  0x12   : > { %p922_p11 = pnand %p609_p9, %p893_p1  ;;  %p705_p7 = scmp.lt.s32.totalorder %s696_s29, %s696_s29 }
  0x14   : > { %p687_p12 = pneg %p922_p11  ;;  %p706_p6 = por %p705_p7, %p704_p5 }
  0x16   : > { %p699_p0 = pnand %p697_p13, %p687_p12 }
  0x18   : > { %p700_p3 = pneg %p699_p0 }
  0x1a   : > { %p707_p4 = pnand %p706_p6, %p700_p3 }
  0x1c   : > { %710 = shalt.err (!%p707_p4)
}
  0x1d   : > { %s826_s30 = smov 128   ;;  %s827_s4 = smov 8  }
  0x1e   : > { %612 = dma.hbm_to_vmem [thread:$0]  (!%p922_p11), %s1045_s1, 512, %s148_s26, [#allocation6], %s826_s30, %s826_s30, %s827_s4  }
  0x1f   : > { %p34_p6 = scmp.ge.s32.totalorder %s32_s28, 2  ;;  %s41_s7 = sadd.s32 1, %s811_s14 }
  0x20   : > { %p48_p4 = scmp.ne.s32.totalorder %s811_s14, %s807_s13  ;;  %p49_p9 = scmp.eq.s32.totalorder %s823_s17, 0 }
  0x21   : > { %s1067_s28 = smov (%p34_p6, %s32_s28), 0  ;;  %p622_p0 = scmp.lt.s32.totalorder %s823_s17, 2 }
  0x22   : > { %p940_p12 = por %p49_p9, %p48_p4  ;;  %p946_p13 = por %p897_p2, %p48_p4 }
  0x23   : > { %s36_s10 = ssub.s32 %s819_s16, %s1067_s28  ;;  %s164_s11 = sand.u32 1, %s811_s14  }
  0x24   : > { %p39_p11 = scmp.eq.s32.totalorder %s36_s10, 0  ;;  %s569_s18 = sshll.u32 %s164_s11, 3 }
  0x25   : > { %s570_s25 = sshll.u32 %s819_s16, 7  ;;  %s168_s30 = scalar_lea.vmem [#allocation2], %s569_s18 }
  0x26   : > { %s955_s19 = scalar_select %p39_p11, %s811_s14, %s41_s7  }
  0x27   : > { %s174_s29 = scalar_lea.hbm %s1044_s0, %s570_s25  ;;  %s176_s4 = sshll.u32 %s168_s30, 4  ;;  %s177_s4 = int_to_ptr.vmem [resolvable:$true] %s176_s4 }
  0x28   : > { %p963_p2 = pnand %p622_p0, %p940_p12  ;;  %s165_s5 = scalar_lea.sflag [#allocation3], %s164_s11 }
  0x29   : > { %s724_s6 = scalar_lea.vmem %s177_s4, 128  ;;  %s828_s7 = smov [#allocation2]  }
  0x2a   : > { %p713_p3 = pneg %p963_p2  ;;  %p725_p5 = scmp.ne.s32.totalorder %s177_s4, %s724_s6 }
  0x2b   : > { %s729_s10 = sshll.u32 %s828_s7, 4  ;;  %s730_s10 = int_to_ptr.vmem [resolvable:$false] %s729_s10 }
  0x2c   : > { %p727_p7 = pnand %p725_p5, %p713_p3  ;;  %s731_s25 = scalar_lea.vmem %s730_s10, 256 }
  0x2d   : > { %p732_p4 = scmp.lt.s32.totalorder %s177_s4, %s730_s10  ;;  %p733_p9 = scmp.lt.s32.totalorder %s731_s25, %s724_s6 }
  0x2e   : > { %p728_p6 = pneg %p727_p7 }
  0x2f   : > { %p734_p11 = por %p733_p9, %p732_p4 }
  0x31   : > { %p735_p10 = pnand %p734_p11, %p728_p6 }
  0x33   : > { %738 = shalt.err (!%p735_p10)
}
  0x34   : > { %616 = dma.hbm_to_vmem [thread:$0]  (!%p963_p2), %s174_s29, 128, %s177_s4, %s165_s5  }
  0x35   : > { %185 = sbr.rel (%p913_p8) target bundleno = 417 (0x1a1), region = 32  ;;  %s974_s8 = sand.u32 (!%p913_p8), 1, %s807_s13  }
  0x36   : > { %s572_s11 = sshll.u32 (!%p913_p8), %s974_s8, 3  ;;  %s188_s18 = scalar_lea.sflag (!%p913_p8), [#allocation3], %s974_s8 }
  0x37   : > { %s191_s26 = scalar_lea.vmem (!%p913_p8), [#allocation2], %s572_s11  ;;  %p1058_p12 = scmp.ne.s32.totalorder (!%p913_p8), %s1051_s22, 0 }
  0x3a   : > { %790 = dma.done.wait (%p1058_p12), %s188_s18, 128  }
  0x3b   : > { %792 = vsyncadd (%p1058_p12), %s188_s18, 4294967168 }
  0x3c   : > { %794 = dma.done.wait (%p893_p1), [#allocation6], 512  }
  0x3d   : > { %796 = vsyncadd (%p893_p1), [#allocation6], 4294966784  ;;  %v829_v0 = vmov 0.0   ;;  %vm830_vm0 = vmmov 0   ;;  %v222_v1 = vld [vmem:[#allocation5 + $0x18] sm:$0xff]  ;;  %v221_v2 = vld [vmem:[#allocation5 + $0x10] sm:$0xff]  ;;  %v319_v12 = vlaneseq }
  0x3e   : > { %590 = vmatprep.subr.mxu0 %v829_v0  ;;  %598 = vmatprep.mubr.msk.f32.mxu0 %vm830_vm0, %v829_v0  ;;  %v220_v3 = vld [vmem:[#allocation5 + $0x8] sm:$0xff]  ;;  %v219_v4 = vld [vmem:[#allocation5] sm:$0xff]  ;;  %v218_v5 = vld [vmem:[%s191_s26] sm:$0xff]  ;;  %vm230_vm1 = vcmask 261120   ;;  %s831_s24 = smov 104   ;;  %s832_s27 = smov 120  }
  0x3f   : > { %591 = vmatpush3.msra.mxu0 %v222_v1  ;;  %v575_v6 = vld [vmem:[%s1046_s2] ss:$0 sm:$0xff]  ;;  %s833_s29 = smov 112   ;;  %v834_v10 = vmov 1983009808   ;;  %v320_v16 = vshrl.u32 %v319_v12, 7 }
  0x40   : > { %592 = vmatprep.subr.mxu0 %v829_v0  ;;  %v317_v11 = vunpack.c.l.s4 %v834_v10  ;;  %v835_v13 = vmov 1934713408   ;;  %s574_s30 = sshll.u32 %s974_s8, 5  ;;  %s584_s4 = sshll.u32 %s815_s15, 9  ;;  %vm450_vm2 = vcmask 64512  }
  0x41   : > { %593 = vmatpush3.msra.mxu0 %v221_v2  ;;  %v349_v14 = vunpack.c.l.s4 %v835_v13  ;;  %s217_s21 = scalar_lea.vmem [#allocation7], %s574_s30  ;;  %s994_s10 = scalar_lea.hbm %s1047_s3, %s584_s4 }
  0x42   : > { %594 = vmatprep.subr.mxu0 %v829_v0  ;;  %v318_v15 = vunpack.c.0.s8 %v317_v11  ;;  %s470_s5 = sshll.u32 %s217_s21, 4  ;;  %s456_s15 = scalar_lea.sflag [#allocation4], %s974_s8  ;;  %s996_s5 = int_to_ptr.vmem [resolvable:$true] %s470_s5 }
  0x43   : > { %595 = vmatpush3.msra.mxu0 %v220_v3  ;;  %v350_v19 = vunpack.c.0.s8 %v349_v14  ;;  %s739_s25 = scalar_lea.vmem %s996_s5, 512  ;;  %s836_s11 = smov [#allocation7]  }
  0x44   : > { %596 = vmatprep.subr.mxu0 %v829_v0  ;;  %v321_v20 = vsub.s32 %v318_v15, %v320_v16  ;;  %p740_p1 = scmp.ne.s32.totalorder %s996_s5, %s739_s25  ;;  %s743_s18 = sshll.u32 %s836_s11, 4  ;;  %s744_s18 = int_to_ptr.vmem [resolvable:$false] %s743_s18 }
  0x45   : > { %597 = vmatpush3.msra.mxu0 %v219_v4  ;;  %v353_v26 = vsub.s32 %v350_v19, %v320_v16  ;;  %s745_s26 = scalar_lea.vmem %s744_s18, 1024  ;;  %p746_p0 = scmp.lt.s32.totalorder %s996_s5, %s744_s18 }
  0x46   : > { %599 = vmatmul.mubr.msk.f32.vlgmr.msra.gmra.mxu0 %vm230_vm1, %v218_v5  ;;  %p741_p8 = pnand %p740_p1, %p946_p13  ;;  %p747_p2 = scmp.lt.s32.totalorder %s745_s26, %s739_s25 }
  0x48   : > { %p742_p10 = pneg %p741_p8  ;;  %p748_p3 = por %p747_p2, %p746_p0 }
  0x4a   : > { %p749_p5 = pnand %p748_p3, %p742_p10 }
 0x106   : > { %v300_v7 = vpop.f32.mrf.mxu0 }
 0x107   : > { %v301_v8 = vadd.f32 %v575_v6, %v300_v7 }
 0x108   : > { %v600_v9 = vpop.f32.mrf.mxu0 }
 0x109   : > { %311 = vrot.lane.b32.xlu1 %v301_v8, %s831_s24  ;;  %305 = vrot.lane.b32.xlu0 %v301_v8, %s832_s27 }
 0x10d   : > { %308 = vrot.lane.b32.xlu0 %v301_v8, %s833_s29 }
 0x17b   : > { %v312_v17 = vpop.permute.xlu1 %311  ;;  %v306_v18 = vpop.permute.xlu0 %305 }
 0x17c   : > { %v330_v21 = vcombine.low %v306_v18, %v312_v17  ;;  %v331_v22 = vcombine.high %v306_v18, %v312_v17 }
 0x17e   : > { %v338_v27 = vrot.slane %v330_v21, %v321_v20  ;;  %v345_v28 = vrot.slane %v331_v22, %v321_v20 }
 0x17f   : > { %v309_v23 = vpop.permute.xlu0 %308 }
 0x180   : > { %v314_v24 = vcombine.low %v301_v8, %v309_v23  ;;  %v315_v25 = vcombine.high %v301_v8, %v309_v23 }
 0x182   : > { %v322_v29 = vrot.slane %v314_v24, %v321_v20  ;;  %v329_v30 = vrot.slane %v315_v25, %v321_v20 }
 0x184   : > { %v346_v31 = vcombine.low %v322_v29, %v338_v27  ;;  %v347_v32 = vcombine.high %v322_v29, %v338_v27  ;;  %v362_v33 = vcombine.low %v329_v30, %v345_v28  ;;  %v363_v34 = vcombine.high %v329_v30, %v345_v28 }
 0x186   : > { %v354_v35 = vrot.slane %v346_v31, %v353_v26  ;;  %v361_v36 = vrot.slane %v347_v32, %v353_v26  ;;  %v370_v37 = vrot.slane %v362_v33, %v353_v26  ;;  %v377_v38 = vrot.slane %v363_v34, %v353_v26 }
 0x188   : > { %v382_v39 = vcombine.low %v354_v35, %v361_v36  ;;  %v577_v40 = vcombine.high %v354_v35, %v361_v36  ;;  %v398_v41 = vcombine.low %v370_v37, %v377_v38  ;;  %v578_v42 = vcombine.high %v370_v37, %v377_v38 }
 0x18a   : > { %v389_v43 = vrot.slane %v382_v39, %v321_v20  ;;  %v397_v44 = vrot.slane %v577_v40, %v321_v20  ;;  %v405_v45 = vrot.slane %v398_v41, %v321_v20  ;;  %v413_v46 = vrot.slane %v578_v42, %v321_v20 }
 0x18c   : > { %v414_v47 = vcombine.low %v389_v43, %v397_v44  ;;  %v415_v48 = vcombine.high %v389_v43, %v397_v44  ;;  %v430_v49 = vcombine.low %v405_v45, %v413_v46  ;;  %v431_v50 = vcombine.high %v405_v45, %v413_v46 }
 0x18e   : > { %v422_v51 = vrot.slane %v414_v47, %v353_v26  ;;  %v429_v52 = vrot.slane %v415_v48, %v353_v26  ;;  %v438_v53 = vrot.slane %v430_v49, %v353_v26  ;;  %v445_v54 = vrot.slane %v431_v50, %v353_v26 }
 0x190   : > { %v446_v55 = vcombine.low %v422_v51, %v438_v53  ;;  %v447_v56 = vcombine.high %v422_v51, %v438_v53  ;;  %v448_v57 = vcombine.low %v429_v52, %v445_v54  ;;  %v449_v58 = vcombine.high %v429_v52, %v445_v54 }
 0x192   : > { %451 = vst.msk [vmem:[%s217_s21] sm:$0xff] %vm450_vm2, %v446_v55  ;;  %452 = vst.msk [vmem:[%s217_s21 + $0x8] sm:$0xff] %vm450_vm2, %v447_v56 }
 0x193   : > { %453 = vst.msk [vmem:[%s217_s21 + $0x10] sm:$0xff] %vm450_vm2, %v448_v57  ;;  %454 = vst.msk [vmem:[%s217_s21 + $0x18] sm:$0xff] %vm450_vm2, %v449_v58 }
 0x194   : > { %752 = shalt.err (!%p749_p5)
}
 0x195   : > { %s753_s20 = scalar_lea.hbm %s994_s10, 512  ;;  %s757_s27 = scalar_lea.hbm %s1047_s3, 1024 }
 0x196   : > { %p754_p7 = scmp.ne.s32.totalorder %s994_s10, %s753_s20  ;;  %p758_p9 = scmp.lt.s32.totalorder %s994_s10, %s1047_s3 }
 0x197   : > { %p759_p11 = scmp.lt.s32.totalorder %s757_s27, %s753_s20 }
 0x198   : > { %p755_p6 = pnand %p754_p7, %p946_p13 }
 0x199   : > { %p760_p12 = por %p759_p11, %p758_p9 }
 0x19a   : > { %p756_p4 = pneg %p755_p6 }
 0x19c   : > { %p761_p1 = pnand %p760_p12, %p756_p4 }
 0x19e   : > { %764 = shalt.err (!%p761_p1)
}
 0x19f   : > { %s837_s4 = smov 128   ;;  %s838_s21 = smov 8  }
 0x1a0   : > { %607 = dma.vmem_to_hbm [thread:$0]  (%p946_p13), %s996_s5, 512, %s994_s10, %s456_s15, %s837_s4, %s837_s4, %s838_s21  }
 0x1a1 PF: > { %s485_s6 = sand.u32 1, %s803_s12   ;;  %p1059_p8 = scmp.ne.s32.totalorder %s1052_s23, 0 }
 0x1a2   : > { %p1060_p10 = scmp.ge.s32.totalorder %s823_s17, 2  ;;  %s486_s7 = scalar_lea.sflag [#allocation4], %s485_s6 }
 0x1a4   : > { %p618_p0 = pnand %p1060_p10, %p1059_p8 }
 0x1a6   : > { %p619_p2 = pneg %p618_p0 }
 0x1a8   : > { %798 = dma.done.wait (%p619_p2), %s486_s7, 512  }
 0x1a9   : > { %800 = vsyncadd (%p619_p2), %s486_s7, 4294966784  ;;  %s20_s17 = sadd.s32 1, %s823_s17   ;;  %s1061_s12 = smov %s807_s13 }
 0x1aa   : > { %p17_p3 = scmp.ge.s32.totalorder %s20_s17, 4   ;;  %s1062_s13 = smov %s811_s14 }
 0x1ab   : > { %s1063_s14 = smov %s955_s19  ;;  %s1064_s15 = smov %s819_s16 }
 0x1ac   : > { %s1065_s16 = smov %s1067_s28  ;;  %19 = sbr.rel (!%p17_p3) target bundleno = 7 (0x7), region = 81 }
 0x1b1   :  { %491 = vsyncpa [#allocation3], 1 }
 0x1b2   :  { %493 = vsyncpa [#allocation3 + $0x1], 1 }
 0x1b3   :  { %494 = vsyncpa [#allocation6], 1 }
 0x1b4   :  { %495 = vsyncpa [#allocation4], 1 }
 0x1b5   :  { %497 = vsyncpa [#allocation4 + $0x1], 1 }

</bundles_post_ra>
